<compile_context>
chip_gen: v6e
topology: v6e:2x2x1
jax: 0.10.0
libtpu: 0.0.40
codegen_flags: <defaults>
</compile_context>

<pallas_src>
import jax
import jax.numpy as jnp
from jax import lax
from jax.experimental import pallas as pl
from jax.experimental.pallas import tpu as pltpu

IGNORE_INDEX = 255
_LANES = 128


def _cdiv(a, b):
    return -(-a // b)


def _rein_loss_kernel(pred_ref, tgt_ref, rew_ref, wsum_ref, cnt_ref):
    """One grid step = one (C, TH, 128) lane-dense slab of logits.

    pred_ref : (C, TH, 128) logits block (class axis leading, pixels dense)
    tgt_ref  : (TH, 128)    class ids (255 == ignore; pad pixels are 255)
    rew_ref  : (TH, 128)    per-pixel reward
    wsum_ref : (1, 1)       resident output: sum(reward * logp[target] * valid)
    cnt_ref  : (1, 1)       resident output: sum(valid)
    """
    ti = pl.program_id(2)

    @pl.when(ti == 0)
    def _init():
        wsum_ref[...] = jnp.zeros_like(wsum_ref)
        cnt_ref[...] = jnp.zeros_like(cnt_ref)

    num_classes, th, lanes = pred_ref.shape

    tgt = tgt_ref[...].astype(jnp.int32)          # in-kernel cast: free VPU op
    rew = rew_ref[...].astype(jnp.float32)

    if num_classes < 32:
        # Small class count: full static unroll (LLO sees the whole chain).
        m = pred_ref[0]                                       # native dtype
        for ci in range(1, num_classes):
            m = jnp.maximum(m, pred_ref[ci])
        s = jnp.zeros((th, lanes), jnp.float32)
        sel = jnp.zeros((th, lanes), pred_ref.dtype)
        for ci in range(num_classes):
            xi = pred_ref[ci]
            s = s + jnp.exp((xi - m).astype(jnp.float32))     # EUP exp, f32 acc
            sel = jnp.where(tgt == ci, xi, sel)               # VPU compare/select
    else:
        # Large class count: bounded unroll keeps vreg pressure down.
        def _max_body(ci, m):
            return jnp.maximum(m, pred_ref[ci])

        m = lax.fori_loop(1, num_classes, _max_body, pred_ref[0], unroll=8)

        def _sum_sel_body(ci, carry):
            s, sel = carry
            xi = pred_ref[ci]
            s = s + jnp.exp((xi - m).astype(jnp.float32))
            sel = jnp.where(tgt == ci, xi, sel)
            return s, sel

        s, sel = lax.fori_loop(
            0, num_classes, _sum_sel_body,
            (jnp.zeros((th, lanes), jnp.float32),
             jnp.zeros((th, lanes), pred_ref.dtype)),
            unroll=8)

    lp_target = sel.astype(jnp.float32) - m.astype(jnp.float32) - jnp.log(s)

    valid = tgt != IGNORE_INDEX                   # pad pixels carry 255 -> excluded
    contrib = jnp.where(valid, rew * lp_target, 0.0)

    # Cross-lane reduce (XLU slot, idle here) -> scalar add into the resident
    # (1,1) output block; written back to HBM once per (image, split).
    wsum_ref[...] = wsum_ref[...] + jnp.sum(contrib, keepdims=True)
    cnt_ref[...] = cnt_ref[...] + jnp.sum(valid.astype(jnp.float32), keepdims=True)


def reinforce_loss(pred_nchw, target_nhw, reward_nhw, *, loss_weight=1.0,
                   max_block_bytes=6 * 1024 * 1024, num_splits=None):
    """loss_weight * RewardWeightedLogLikelihoodLoss(pred, target, reward)."""
    n, c, h, w = pred_nchw.shape
    assert target_nhw.shape == (n, h, w)
    assert reward_nhw.shape == (n, h, w)

    p = h * w                                     # pixels per image
    rows_raw = _cdiv(p, _LANES)                   # lane-dense pixel rows

    # Optional split of the row-tile axis so a single-image call can still use
    # both TensorCores on v7x (no-op / harmless on single-TC v5e / v6e).
    if num_splits is None:
        num_splits = 2 if (n == 1 and rows_raw >= 16) else 1

    # Row-tile size from a byte budget on the logits block: big enough that the
    # per-step DMA dominates the ~0.35 us grid-step overhead, small enough that
    # the double-buffered footprint fits every generation's scoped VMEM.
    itemsize = pred_nchw.dtype.itemsize
    bytes_per_row = max(1, c * _LANES * itemsize)
    tile_rows = max(8, max_block_bytes // bytes_per_row)

    per_split = _cdiv(rows_raw, num_splits)
    if num_splits == 1 and tile_rows >= rows_raw:
        th = max(rows_raw, 1)                     # single full-extent block
        num_t = 1
    else:
        th = max(8, (min(tile_rows, per_split) // 8) * 8)     # multiple of 8
        num_t = _cdiv(per_split, th)
    rows = th * num_t * num_splits
    pad_pixels = rows * _LANES - p

    # Flatten pixels -> (rows, 128). Reshapes are contiguous views; only the
    # (rare) pad is an extra copy. Padded pixels are labelled ignore (255).
    pred_f = pred_nchw.reshape(n, c, p)
    tgt_f = target_nhw.reshape(n, p)
    rew_f = reward_nhw.reshape(n, p)
    if pad_pixels > 0:
        pred_f = jnp.pad(pred_f, ((0, 0), (0, 0), (0, pad_pixels)))
        tgt_f = jnp.pad(tgt_f, ((0, 0), (0, pad_pixels)),
                        constant_values=IGNORE_INDEX)
        rew_f = jnp.pad(rew_f, ((0, 0), (0, pad_pixels)))
    pred_l = pred_f.reshape(n, c, rows, _LANES)
    tgt_l = tgt_f.reshape(n, rows, _LANES)
    rew_l = rew_f.reshape(n, rows, _LANES)

    # Explicit scoped-VMEM budget: double-buffered input blocks + in-kernel f32
    # temporaries, with headroom; stays below v7x's 64 MiB physical VMEM.
    blk_bytes = (c * th * _LANES * itemsize
                 + th * _LANES * tgt_l.dtype.itemsize
                 + th * _LANES * rew_l.dtype.itemsize)
    live_bytes = 8 * th * _LANES * 4
    vmem_limit = int(min(max(2 * blk_bytes + live_bytes + (1 << 20),
                             16 * 1024 * 1024), 48 * 1024 * 1024))

    wsum_p, cnt_p = pl.pallas_call(
        _rein_loss_kernel,
        out_shape=(
            jax.ShapeDtypeStruct((n, num_splits, 1, 1), jnp.float32),
            jax.ShapeDtypeStruct((n, num_splits, 1, 1), jnp.float32),
        ),
        grid_spec=pltpu.PrefetchScalarGridSpec(
            num_scalar_prefetch=0,
            grid=(n, num_splits, num_t),
            in_specs=[
                pl.BlockSpec((None, c, th, _LANES),
                             lambda ni, si, ti: (ni, 0, si * num_t + ti, 0)),
                pl.BlockSpec((None, th, _LANES),
                             lambda ni, si, ti: (ni, si * num_t + ti, 0)),
                pl.BlockSpec((None, th, _LANES),
                             lambda ni, si, ti: (ni, si * num_t + ti, 0)),
            ],
            out_specs=[
                pl.BlockSpec((None, None, 1, 1),
                             lambda ni, si, ti: (ni, si, 0, 0)),
                pl.BlockSpec((None, None, 1, 1),
                             lambda ni, si, ti: (ni, si, 0, 0)),
            ],
        ),
        compiler_params=pltpu.CompilerParams(
            # batch and split axes can shard across TensorCores; the row-tile
            # axis carries the resident (1,1) accumulators.
            dimension_semantics=("parallel", "parallel", "arbitrary"),
            vmem_limit_bytes=vmem_limit,
        ),
    )(pred_l, tgt_l, rew_l)

    wsum = jnp.sum(wsum_p)
    cnt = jnp.sum(cnt_p)
    loss = jnp.where(cnt > 0, -wsum / cnt, jnp.float32(0.0))
    return jnp.asarray(loss_weight, jnp.float32) * loss


def _reference_loss(pred_nchw, target_nhw, reward_nhw, loss_weight=1.0):
    """Pure-JAX reference mirroring the PyTorch code (for verification)."""
    logp = jax.nn.log_softmax(pred_nchw.astype(jnp.float32), axis=1)   # (N,C,H,W)
    tgt_m = jnp.where(target_nhw == IGNORE_INDEX, 0, target_nhw)
    lp_t = jnp.take_along_axis(logp, tgt_m[:, None, :, :], axis=1)[:, 0]
    valid = (target_nhw != IGNORE_INDEX).astype(jnp.float32)
    weighted = reward_nhw.astype(jnp.float32) * lp_t * valid
    n_valid = valid.sum()
    return loss_weight * jnp.where(n_valid > 0, -weighted.sum() / n_valid, 0.0)


if __name__ == "__main__":
    # ReinforceLoss has no learned parameters; only loss_weight (deterministic).
    loss_weight = 1.0
    key = jax.random.PRNGKey(0)

    def make_inputs(k, n, c, h, w, ignore_frac=0.125):
        k1, k2, k3, k4 = jax.random.split(k, 4)
        pred = jax.random.normal(k1, (n, c, h, w), dtype=jnp.float32)
        target = jax.random.randint(k2, (n, h, w), 0, c, dtype=jnp.int32)
        ignore = jax.random.uniform(k3, (n, h, w)) < ignore_frac
        target = jnp.where(ignore, IGNORE_INDEX, target)
        reward = jax.random.normal(k4, (n, h, w), dtype=jnp.float32)
        return pred, target, reward

    k1, k2, k3 = jax.random.split(key, 3)

    # Case 1: lane-aligned pixel count (H*W % 128 == 0), batch-parallel grid.
    pred, target, reward = make_inputs(k1, 2, 4, 16, 16)
    loss = jax.block_until_ready(
        reinforce_loss(pred, target, reward, loss_weight=loss_weight))
    ref = jax.block_until_ready(_reference_loss(pred, target, reward, loss_weight))
    assert jnp.allclose(loss, ref, rtol=1e-5, atol=1e-5), (loss, ref)

    # Case 2: ragged pixel count + multiple row tiles (exercises ignore-padding
    # and the resident accumulator across grid steps).
    pred, target, reward = make_inputs(k2, 1, 3, 40, 36)
    loss = jax.block_until_ready(
        reinforce_loss(pred, target, reward, loss_weight=loss_weight,
                       max_block_bytes=1))          # force th=8, num_t>1
    ref = jax.block_until_ready(_reference_loss(pred, target, reward, loss_weight))
    assert jnp.allclose(loss, ref, rtol=1e-5, atol=1e-5), (loss, ref)

    # Case 3: explicit 2-way row-split (v7x dual-TensorCore path); harmless on
    # single-TC chips.
    pred, target, reward = make_inputs(k3, 1, 4, 32, 32)
    loss = jax.block_until_ready(
        reinforce_loss(pred, target, reward, loss_weight=loss_weight,
                       num_splits=2))
    ref = jax.block_until_ready(_reference_loss(pred, target, reward, loss_weight))
    assert jnp.allclose(loss, ref, rtol=1e-5, atol=1e-5), (loss, ref)

    print("KERNEL_OK")
</pallas_src>

<mosaic_0001>
module attributes {stable_mosaic.version = 11 : i64} {
  func.func @_rein_loss_kernel(%arg0: i32, %arg1: i32, %arg2: i32, %arg3: memref<1x4x2x128xf32, #tpu.memory_space<vmem>>, %arg4: memref<1x2x128xi32, #tpu.memory_space<vmem>>, %arg5: memref<1x2x128xf32, #tpu.memory_space<vmem>>, %arg6: memref<1x1x1x1xf32, #tpu.memory_space<vmem>>, %arg7: memref<1x1x1x1xf32, #tpu.memory_space<vmem>>) attributes {dimension_semantics = [#tpu.dimension_semantics<parallel>, #tpu.dimension_semantics<parallel>, #tpu.dimension_semantics<arbitrary>], iteration_bounds = array<i64: 2, 1, 1>, scalar_prefetch = 0 : i64, scratch_operands = 0 : i64, tpu.core_type = #tpu.core_type<tc>, window_params = [{transform_indices = @transform_0, window_bounds = array<i64: 1, 4, 2, 128>}, {transform_indices = @transform_1, window_bounds = array<i64: 1, 2, 128>}, {transform_indices = @transform_2, window_bounds = array<i64: 1, 2, 128>}, {transform_indices = @transform_3, window_bounds = array<i64: 1, 1, 1, 1>}, {transform_indices = @transform_4, window_bounds = array<i64: 1, 1, 1, 1>}]} {
    %c0_i32 = arith.constant 0 : i32
    %0 = arith.cmpi eq, %arg2, %c0_i32 : i32
    %1 = arith.extui %0 : i1 to i32
    %c0_i32_0 = arith.constant 0 : i32
    %2 = arith.cmpi ne, %1, %c0_i32_0 : i32
    scf.if %2 {
      %cst_56 = arith.constant 0.000000e+00 : f32
      %84 = vector.broadcast %cst_56 : f32 to vector<1x1xf32>
      %c0_57 = arith.constant 0 : index
      %c0_58 = arith.constant 0 : index
      %c0_59 = arith.constant 0 : index
      %c0_60 = arith.constant 0 : index
      %85 = vector.load %arg6[%c0_57, %c0_58, %c0_59, %c0_60] : memref<1x1x1x1xf32, #tpu.memory_space<vmem>>, vector<1x1x1x1xf32>
      %86 = vector.shape_cast %85 : vector<1x1x1x1xf32> to vector<1x1xf32>
      %87 = vector.shape_cast %84 : vector<1x1xf32> to vector<1x1x1x1xf32>
      tpu.vector_store %arg6[%c0_57, %c0_58, %c0_59, %c0_60], %87 {strides = array<i32>} : memref<1x1x1x1xf32, #tpu.memory_space<vmem>>, vector<1x1x1x1xf32>,
      %cst_61 = arith.constant 0.000000e+00 : f32
      %88 = vector.broadcast %cst_61 : f32 to vector<1x1xf32>
      %c0_62 = arith.constant 0 : index
      %c0_63 = arith.constant 0 : index
      %c0_64 = arith.constant 0 : index
      %c0_65 = arith.constant 0 : index
      %89 = vector.load %arg7[%c0_62, %c0_63, %c0_64, %c0_65] : memref<1x1x1x1xf32, #tpu.memory_space<vmem>>, vector<1x1x1x1xf32>
      %90 = vector.shape_cast %89 : vector<1x1x1x1xf32> to vector<1x1xf32>
      %91 = vector.shape_cast %88 : vector<1x1xf32> to vector<1x1x1x1xf32>
      tpu.vector_store %arg7[%c0_62, %c0_63, %c0_64, %c0_65], %91 {strides = array<i32>} : memref<1x1x1x1xf32, #tpu.memory_space<vmem>>, vector<1x1x1x1xf32>,
    } else {
    }
    %c0 = arith.constant 0 : index
    %c0_1 = arith.constant 0 : index
    %c0_2 = arith.constant 0 : index
    %3 = vector.load %arg4[%c0, %c0_1, %c0_2] : memref<1x2x128xi32, #tpu.memory_space<vmem>>, vector<1x2x128xi32>
    %4 = vector.shape_cast %3 : vector<1x2x128xi32> to vector<2x128xi32>
    %c0_3 = arith.constant 0 : index
    %c0_4 = arith.constant 0 : index
    %c0_5 = arith.constant 0 : index
    %5 = vector.load %arg5[%c0_3, %c0_4, %c0_5] : memref<1x2x128xf32, #tpu.memory_space<vmem>>, vector<1x2x128xf32>
    %6 = vector.shape_cast %5 : vector<1x2x128xf32> to vector<2x128xf32>
    %c0_6 = arith.constant 0 : index
    %c0_7 = arith.constant 0 : index
    %c0_8 = arith.constant 0 : index
    %c0_9 = arith.constant 0 : index
    %7 = vector.load %arg3[%c0_6, %c0_7, %c0_8, %c0_9] : memref<1x4x2x128xf32, #tpu.memory_space<vmem>>, vector<1x1x2x128xf32>
    %8 = vector.shape_cast %7 : vector<1x1x2x128xf32> to vector<2x128xf32>
    %c0_10 = arith.constant 0 : index
    %c1 = arith.constant 1 : index
    %c0_11 = arith.constant 0 : index
    %c0_12 = arith.constant 0 : index
    %9 = vector.load %arg3[%c0_10, %c1, %c0_11, %c0_12] : memref<1x4x2x128xf32, #tpu.memory_space<vmem>>, vector<1x1x2x128xf32>
    %10 = vector.shape_cast %9 : vector<1x1x2x128xf32> to vector<2x128xf32>
    %11 = arith.maximumf %8, %10 : vector<2x128xf32>
    %c0_13 = arith.constant 0 : index
    %c2 = arith.constant 2 : index
    %c0_14 = arith.constant 0 : index
    %c0_15 = arith.constant 0 : index
    %12 = vector.load %arg3[%c0_13, %c2, %c0_14, %c0_15] : memref<1x4x2x128xf32, #tpu.memory_space<vmem>>, vector<1x1x2x128xf32>
    %13 = vector.shape_cast %12 : vector<1x1x2x128xf32> to vector<2x128xf32>
    %14 = arith.maximumf %11, %13 : vector<2x128xf32>
    %c0_16 = arith.constant 0 : index
    %c3 = arith.constant 3 : index
    %c0_17 = arith.constant 0 : index
    %c0_18 = arith.constant 0 : index
    %15 = vector.load %arg3[%c0_16, %c3, %c0_17, %c0_18] : memref<1x4x2x128xf32, #tpu.memory_space<vmem>>, vector<1x1x2x128xf32>
    %16 = vector.shape_cast %15 : vector<1x1x2x128xf32> to vector<2x128xf32>
    %17 = arith.maximumf %14, %16 : vector<2x128xf32>
    %cst = arith.constant 0.000000e+00 : f32
    %18 = vector.broadcast %cst : f32 to vector<2x128xf32>
    %cst_19 = arith.constant 0.000000e+00 : f32
    %19 = vector.broadcast %cst_19 : f32 to vector<2x128xf32>
    %c0_20 = arith.constant 0 : index
    %c0_21 = arith.constant 0 : index
    %c0_22 = arith.constant 0 : index
    %c0_23 = arith.constant 0 : index
    %20 = vector.load %arg3[%c0_20, %c0_21, %c0_22, %c0_23] : memref<1x4x2x128xf32, #tpu.memory_space<vmem>>, vector<1x1x2x128xf32>
    %21 = vector.shape_cast %20 : vector<1x1x2x128xf32> to vector<2x128xf32>
    %22 = arith.subf %21, %17 : vector<2x128xf32>
    %23 = math.exp %22 : vector<2x128xf32>
    %24 = arith.addf %18, %23 : vector<2x128xf32>
    %c0_i32_24 = arith.constant 0 : i32
    %25 = vector.broadcast %c0_i32_24 : i32 to vector<2x128xi32>
    %26 = arith.cmpi eq, %4, %25 : vector<2x128xi32>
    %27 = arith.select %26, %21, %19 : vector<2x128xi1>, vector<2x128xf32>
    %c0_25 = arith.constant 0 : index
    %c1_26 = arith.constant 1 : index
    %c0_27 = arith.constant 0 : index
    %c0_28 = arith.constant 0 : index
    %28 = vector.load %arg3[%c0_25, %c1_26, %c0_27, %c0_28] : memref<1x4x2x128xf32, #tpu.memory_space<vmem>>, vector<1x1x2x128xf32>
    %29 = vector.shape_cast %28 : vector<1x1x2x128xf32> to vector<2x128xf32>
    %30 = arith.subf %29, %17 : vector<2x128xf32>
    %31 = math.exp %30 : vector<2x128xf32>
    %32 = arith.addf %24, %31 : vector<2x128xf32>
    %c1_i32 = arith.constant 1 : i32
    %33 = vector.broadcast %c1_i32 : i32 to vector<2x128xi32>
    %34 = arith.cmpi eq, %4, %33 : vector<2x128xi32>
    %35 = arith.select %34, %29, %27 : vector<2x128xi1>, vector<2x128xf32>
    %c0_29 = arith.constant 0 : index
    %c2_30 = arith.constant 2 : index
    %c0_31 = arith.constant 0 : index
    %c0_32 = arith.constant 0 : index
    %36 = vector.load %arg3[%c0_29, %c2_30, %c0_31, %c0_32] : memref<1x4x2x128xf32, #tpu.memory_space<vmem>>, vector<1x1x2x128xf32>
    %37 = vector.shape_cast %36 : vector<1x1x2x128xf32> to vector<2x128xf32>
    %38 = arith.subf %37, %17 : vector<2x128xf32>
    %39 = math.exp %38 : vector<2x128xf32>
    %40 = arith.addf %32, %39 : vector<2x128xf32>
    %c2_i32 = arith.constant 2 : i32
    %41 = vector.broadcast %c2_i32 : i32 to vector<2x128xi32>
    %42 = arith.cmpi eq, %4, %41 : vector<2x128xi32>
    %43 = arith.select %42, %37, %35 : vector<2x128xi1>, vector<2x128xf32>
    %c0_33 = arith.constant 0 : index
    %c3_34 = arith.constant 3 : index
    %c0_35 = arith.constant 0 : index
    %c0_36 = arith.constant 0 : index
    %44 = vector.load %arg3[%c0_33, %c3_34, %c0_35, %c0_36] : memref<1x4x2x128xf32, #tpu.memory_space<vmem>>, vector<1x1x2x128xf32>
    %45 = vector.shape_cast %44 : vector<1x1x2x128xf32> to vector<2x128xf32>
    %46 = arith.subf %45, %17 : vector<2x128xf32>
    %47 = math.exp %46 : vector<2x128xf32>
    %48 = arith.addf %40, %47 : vector<2x128xf32>
    %c3_i32 = arith.constant 3 : i32
    %49 = vector.broadcast %c3_i32 : i32 to vector<2x128xi32>
    %50 = arith.cmpi eq, %4, %49 : vector<2x128xi32>
    %51 = arith.select %50, %45, %43 : vector<2x128xi1>, vector<2x128xf32>
    %52 = arith.subf %51, %17 : vector<2x128xf32>
    %53 = math.log %48 : vector<2x128xf32>
    %54 = arith.subf %52, %53 : vector<2x128xf32>
    %c255_i32 = arith.constant 255 : i32
    %55 = vector.broadcast %c255_i32 : i32 to vector<2x128xi32>
    %56 = arith.cmpi ne, %4, %55 : vector<2x128xi32>
    %57 = arith.mulf %6, %54 : vector<2x128xf32>
    %cst_37 = arith.constant 0.000000e+00 : f32
    %58 = vector.broadcast %cst_37 : f32 to vector<2x128xf32>
    %59 = arith.select %56, %57, %58 : vector<2x128xi1>, vector<2x128xf32>
    %c0_38 = arith.constant 0 : index
    %c0_39 = arith.constant 0 : index
    %c0_40 = arith.constant 0 : index
    %c0_41 = arith.constant 0 : index
    %60 = vector.load %arg6[%c0_38, %c0_39, %c0_40, %c0_41] : memref<1x1x1x1xf32, #tpu.memory_space<vmem>>, vector<1x1x1x1xf32>
    %61 = vector.shape_cast %60 : vector<1x1x1x1xf32> to vector<1x1xf32>
    %62 = vector.shape_cast %59 : vector<2x128xf32> to vector<1x2x128xf32>
    %cst_42 = arith.constant dense<0.000000e+00> : vector<1xf32>
    %63 = vector.multi_reduction <add>, %62, %cst_42 [1, 2] : vector<1x2x128xf32> to vector<1xf32>
    %64 = vector.shape_cast %63 : vector<1xf32> to vector<1x1x1xf32>
    %65 = vector.extract %64[0, 0, 0] : f32 from vector<1x1x1xf32>
    %66 = vector.broadcast %65 : f32 to vector<1x1xf32>
    %67 = arith.addf %61, %66 : vector<1x1xf32>
    %c0_43 = arith.constant 0 : index
    %c0_44 = arith.constant 0 : index
    %c0_45 = arith.constant 0 : index
    %c0_46 = arith.constant 0 : index
    %68 = vector.load %arg6[%c0_43, %c0_44, %c0_45, %c0_46] : memref<1x1x1x1xf32, #tpu.memory_space<vmem>>, vector<1x1x1x1xf32>
    %69 = vector.shape_cast %68 : vector<1x1x1x1xf32> to vector<1x1xf32>
    %70 = vector.shape_cast %67 : vector<1x1xf32> to vector<1x1x1x1xf32>
    tpu.vector_store %arg6[%c0_43, %c0_44, %c0_45, %c0_46], %70 {strides = array<i32>} : memref<1x1x1x1xf32, #tpu.memory_space<vmem>>, vector<1x1x1x1xf32>,
    %c0_47 = arith.constant 0 : index
    %c0_48 = arith.constant 0 : index
    %c0_49 = arith.constant 0 : index
    %c0_50 = arith.constant 0 : index
    %71 = vector.load %arg7[%c0_47, %c0_48, %c0_49, %c0_50] : memref<1x1x1x1xf32, #tpu.memory_space<vmem>>, vector<1x1x1x1xf32>
    %72 = vector.shape_cast %71 : vector<1x1x1x1xf32> to vector<1x1xf32>
    %73 = arith.extui %56 : vector<2x128xi1> to vector<2x128xi32>
    %74 = arith.sitofp %73 : vector<2x128xi32> to vector<2x128xf32>
    %75 = vector.shape_cast %74 : vector<2x128xf32> to vector<1x2x128xf32>
    %cst_51 = arith.constant dense<0.000000e+00> : vector<1xf32>
    %76 = vector.multi_reduction <add>, %75, %cst_51 [1, 2] : vector<1x2x128xf32> to vector<1xf32>
    %77 = vector.shape_cast %76 : vector<1xf32> to vector<1x1x1xf32>
    %78 = vector.extract %77[0, 0, 0] : f32 from vector<1x1x1xf32>
    %79 = vector.broadcast %78 : f32 to vector<1x1xf32>
    %80 = arith.addf %72, %79 : vector<1x1xf32>
    %c0_52 = arith.constant 0 : index
    %c0_53 = arith.constant 0 : index
    %c0_54 = arith.constant 0 : index
    %c0_55 = arith.constant 0 : index
    %81 = vector.load %arg7[%c0_52, %c0_53, %c0_54, %c0_55] : memref<1x1x1x1xf32, #tpu.memory_space<vmem>>, vector<1x1x1x1xf32>
    %82 = vector.shape_cast %81 : vector<1x1x1x1xf32> to vector<1x1xf32>
    %83 = vector.shape_cast %80 : vector<1x1xf32> to vector<1x1x1x1xf32>
    tpu.vector_store %arg7[%c0_52, %c0_53, %c0_54, %c0_55], %83 {strides = array<i32>} : memref<1x1x1x1xf32, #tpu.memory_space<vmem>>, vector<1x1x1x1xf32>,
    return
  }
  func.func @transform_0(%arg0: i32, %arg1: i32, %arg2: i32) -> (i32, i32, i32, i32) {
    %c1_i32 = arith.constant 1 : i32
    %0 = arith.muli %arg1, %c1_i32 : i32
    %1 = arith.addi %0, %arg2 : i32
    %c0_i32 = arith.constant 0 : i32
    %c0_i32_0 = arith.constant 0 : i32
    %c0_i32_1 = arith.constant 0 : i32
    return %arg0, %c0_i32, %1, %c0_i32_0 : i32, i32, i32, i32
  }
  func.func @transform_1(%arg0: i32, %arg1: i32, %arg2: i32) -> (i32, i32, i32) {
    %c1_i32 = arith.constant 1 : i32
    %0 = arith.muli %arg1, %c1_i32 : i32
    %1 = arith.addi %0, %arg2 : i32
    %c0_i32 = arith.constant 0 : i32
    %c0_i32_0 = arith.constant 0 : i32
    return %arg0, %1, %c0_i32 : i32, i32, i32
  }
  func.func @transform_2(%arg0: i32, %arg1: i32, %arg2: i32) -> (i32, i32, i32) {
    %c1_i32 = arith.constant 1 : i32
    %0 = arith.muli %arg1, %c1_i32 : i32
    %1 = arith.addi %0, %arg2 : i32
    %c0_i32 = arith.constant 0 : i32
    %c0_i32_0 = arith.constant 0 : i32
    return %arg0, %1, %c0_i32 : i32, i32, i32
  }
  func.func @transform_3(%arg0: i32, %arg1: i32, %arg2: i32) -> (i32, i32, i32, i32) {
    %c0_i32 = arith.constant 0 : i32
    %c0_i32_0 = arith.constant 0 : i32
    %c0_i32_1 = arith.constant 0 : i32
    return %arg0, %arg1, %c0_i32, %c0_i32_0 : i32, i32, i32, i32
  }
  func.func @transform_4(%arg0: i32, %arg1: i32, %arg2: i32) -> (i32, i32, i32, i32) {
    %c0_i32 = arith.constant 0 : i32
    %c0_i32_0 = arith.constant 0 : i32
    %c0_i32_1 = arith.constant 0 : i32
    return %arg0, %arg1, %c0_i32, %c0_i32_0 : i32, i32, i32, i32
  }
}

</mosaic_0001>

<bundles_post_ra>
// kernel: tpu_custom_call.1
= control target key start
LH: loop header
LB: loop body
LE: loop exit
PB: predicated region body
PF: predicated region fallthrough
CT: control target
= control target key end

     0   :  { %s1029_s0 = inlined_call_operand.hbm [shape: f32[2,4,2,128], index: 0, kind: input, shape index: {}]   ;;  %s1030_s1 = inlined_call_operand.hbm [shape: s32[2,2,128], index: 1, kind: input, shape index: {}]   ;;  %s1031_s2 = inlined_call_operand.hbm [shape: f32[2,2,128], index: 2, kind: input, shape index: {}]   ;;  %s1032_s3 = inlined_call_operand.vmem [shape: f32[2,1,1,1], index: 3, kind: output, shape index: {0}]   ;;  %s1033_s4 = inlined_call_operand.vmem [shape: f32[2,1,1,1], index: 4, kind: output, shape index: {1}]  }
   0x1   :  { %1035 = sst [smem:[#allocation9_spill]] %s1030_s1 }
   0x2   :  { %1036 = sst [smem:[#allocation10_spill]] %s1031_s2 }
   0x3   :  { %10 = vsyncpa [#allocation3], 0 }
   0x4   :  { %12 = vsyncpa [#allocation3 + $0x1], 0 }
   0x5   :  { %13 = vsyncpa [#allocation5], 0 }
   0x6   :  { %15 = vsyncpa [#allocation5 + $0x1], 0  ;;  %s872_s15 = smov 0   ;;  %s874_s16 = smov 0  }
   0x7   :  { %s876_s17 = smov 0   ;;  %s878_s18 = smov 0  }
   0x8   :  { %s880_s19 = smov 0   ;;  %s882_s20 = smov 0  }
   0x9 LB: > { %s1034_s21 = sadd.s32 4294967295, %s839_s20   ;;  %s40_s22 = sadd.s32 1, %s835_s19  ;;  %s839_s20 = sphi %s882_s20, %s21_s20   ;;  %s835_s19 = sphi %s880_s19, %s1047_s19   ;;  %s831_s18 = sphi %s878_s18, %s1046_s18   ;;  %s827_s17 = sphi %s876_s17, %s1045_s17   ;;  %s823_s16 = sphi %s874_s16, %s1044_s16   ;;  %s819_s15 = sphi %s872_s15, %s1043_s15  }
   0xa   : > { %p42_p0 = scmp.ge.s32.totalorder %s40_s22, 2  ;;  %s51_s23 = sadd.s32 1, %s827_s17 }
   0xb   : > { %p58_p1 = scmp.ne.s32.totalorder %s827_s17, %s823_s16  ;;  %p59_p2 = scmp.eq.s32.totalorder %s839_s20, 0 }
   0xc   : > { %s1049_s22 = smov (%p42_p0, %s40_s22), 0  ;;  %p64_p4 = scmp.ne.s32.totalorder %s823_s16, %s819_s15 }
   0xd   : > { %p60_p3 = por %p59_p2, %p58_p1  ;;  %s46_s24 = ssub.s32 %s835_s19, %s1049_s22 }
   0xe   : > { %p65_p5 = scmp.eq.s32.totalorder %s1034_s21, 0  ;;  %p49_p6 = scmp.eq.s32.totalorder %s46_s24, 0 }
   0xf   : > { %p639_p8 = scmp.lt.s32.totalorder %s839_s20, 2  ;;  %s922_s27 = sand.u32 1, %s827_s17  }
  0x10   : > { %p913_p7 = por %p65_p5, %p64_p4  ;;  %s227_s29 = sand.u32 1, %s839_s20  }
  0x11   : > { %s919_s26 = scalar_select %p49_p6, %s827_s17, %s51_s23  }
  0x12   : > { %p924_p9 = pnand %p639_p8, %p60_p3  ;;  %s604_s30 = sshll.u32 %s922_s27, 1 }
  0x13   : > { %s605_s5 = sshll.u32 %s835_s19, 5  ;;  %s1039_s1 = sld [smem:[#allocation9_spill]] }
  0x14   : > { %s231_s9 = scalar_lea.vmem [#allocation4], %s604_s30  ;;  %s936_s11 = scalar_lea.sflag [#allocation5], %s227_s29 }
  0x15   : > { %s240_s10 = sshll.u32 %s231_s9, 4  ;;  %p703_p10 = pneg %p924_p9  ;;  %s241_s10 = int_to_ptr.vmem [resolvable:$true] %s240_s10 }
  0x16   : > { %s714_s12 = scalar_lea.vmem %s241_s10, 32  ;;  %s841_s13 = smov [#allocation4]  }
  0x17   : > { %p715_p11 = scmp.ne.s32.totalorder %s241_s10, %s714_s12  ;;  %s719_s14 = sshll.u32 %s841_s13, 4  ;;  %s720_s14 = int_to_ptr.vmem [resolvable:$false] %s719_s14 }
  0x18   : > { %s721_s15 = scalar_lea.vmem %s720_s14, 64  ;;  %p722_p0 = scmp.lt.s32.totalorder %s241_s10, %s720_s14 }
  0x19   : > { %s238_s8 = scalar_lea.hbm %s1039_s1, %s605_s5  ;;  %p717_p12 = pnand %p715_p11, %p703_p10 }
  0x1a   : > { %p723_p1 = scmp.lt.s32.totalorder %s721_s15, %s714_s12 }
  0x1b   : > { %p718_p13 = pneg %p717_p12 }
  0x1c   : > { %p724_p2 = por %p723_p1, %p722_p0 }
  0x1e   : > { %p725_p3 = pnand %p724_p2, %p718_p13 }
  0x20   : > { %728 = shalt.err (!%p725_p3)
}
  0x21   : > { %635 = dma.hbm_to_vmem [thread:$0]  (!%p924_p9), %s238_s8, 32, %s241_s10, %s936_s11  }
  0x22   : > { %s1040_s2 = sld [smem:[#allocation10_spill]]  ;;  %p608_p4 = scmp.ge.s32.totalorder %s839_s20, 1 }
  0x23   : > { %p265_p5 = scmp.lt.s32.totalorder %s839_s20, 3  ;;  %s601_s7 = sshll.u32 %s922_s27, 3 }
  0x24   : > { %s618_s9 = sshll.u32 %s835_s19, 7  ;;  %s208_s15 = scalar_lea.vmem [#allocation2], %s601_s7 }
  0x25   : > { %p953_p6 = pnand %p608_p4, %p265_p5  ;;  %s216_s14 = scalar_lea.hbm %s1029_s0, %s618_s9 }
  0x26   : > { %s217_s8 = sshll.u32 %s208_s15, 4  ;;  %s251_s10 = scalar_lea.vmem [#allocation6], %s604_s30  ;;  %s218_s8 = int_to_ptr.vmem [resolvable:$true] %s217_s8 }
  0x27   : > { %s260_s23 = sshll.u32 %s251_s10, 4  ;;  %s742_s24 = scalar_lea.vmem %s218_s8, 128  ;;  %s261_s23 = int_to_ptr.vmem [resolvable:$true] %s260_s23 }
  0x28   : > { %s949_s29 = scalar_lea.hbm %s1040_s2, %s605_s5  ;;  %s205_s5 = scalar_lea.sflag [#allocation3], %s922_s27 }
  0x29   : > { %p743_p8 = scmp.ne.s32.totalorder %s218_s8, %s742_s24  ;;  %s842_s21 = smov [#allocation2]  }
  0x2a   : > { %s747_s1 = sshll.u32 %s842_s21, 4  ;;  %s748_s1 = int_to_ptr.vmem [resolvable:$false] %s747_s1 }
  0x2b   : > { %p745_p11 = pnand %p743_p8, %p703_p10  ;;  %s749_s2 = scalar_lea.vmem %s748_s1, 256 }
  0x2c   : > { %p750_p13 = scmp.lt.s32.totalorder %s218_s8, %s748_s1  ;;  %p751_p0 = scmp.lt.s32.totalorder %s749_s2, %s742_s24 }
  0x2d   : > { %p746_p12 = pneg %p745_p11 }
  0x2e   : > { %p752_p1 = por %p751_p0, %p750_p13 }
  0x30   : > { %p753_p2 = pnand %p752_p1, %p746_p12 }
  0x32   : > { %756 = shalt.err (!%p753_p2)
}
  0x33   : > { %s843_s7 = smov 32   ;;  %s844_s30 = smov 2  }
  0x34   : > { %632 = dma.hbm_to_vmem [thread:$0]  (!%p924_p9), %s216_s14, 128, %s218_s8, %s205_s5, %s843_s7, %s843_s7, %s844_s30  }
  0x35   : > { %s770_s27 = scalar_lea.vmem %s261_s23, 32  ;;  %s845_s21 = smov [#allocation6]  }
  0x36   : > { %p771_p3 = scmp.ne.s32.totalorder %s261_s23, %s770_s27  ;;  %s775_s9 = sshll.u32 %s845_s21, 4  ;;  %s776_s9 = int_to_ptr.vmem [resolvable:$false] %s775_s9 }
  0x37   : > { %s777_s1 = scalar_lea.vmem %s776_s9, 64  ;;  %p778_p8 = scmp.lt.s32.totalorder %s261_s23, %s776_s9 }
  0x38   : > { %p773_p4 = pnand %p771_p3, %p703_p10  ;;  %p779_p11 = scmp.lt.s32.totalorder %s777_s1, %s770_s27 }
  0x3a   : > { %p774_p5 = pneg %p773_p4  ;;  %p780_p12 = por %p779_p11, %p778_p8 }
  0x3c   : > { %p781_p13 = pnand %p780_p12, %p774_p5 }
  0x3e   : > { %784 = shalt.err (!%p781_p13)
}
  0x3f   : > { %638 = dma.hbm_to_vmem [thread:$0]  (!%p924_p9), %s949_s29, 32, %s261_s23, %s936_s11  }
  0x40   : > { %269 = sbr.rel (%p953_p6) target bundleno = 336 (0x150), region = 32  ;;  %s980_s2 = sand.u32 (!%p953_p6), 1, %s823_s16  }
  0x41   : > { %s609_s12 = sshll.u32 (!%p953_p6), %s980_s2, 3  ;;  %s272_s13 = scalar_lea.sflag (!%p953_p6), [#allocation3], %s980_s2 }
  0x42   : > { %s275_s14 = scalar_lea.vmem (!%p953_p6), [#allocation2], %s609_s12 }
  0x45   : > { %810 = dma.done.wait (%p913_p7), %s272_s13, 128  }
  0x46   : > { %812 = vsyncadd (%p913_p7), %s272_s13, 4294967168  ;;  %s1042_s28 = sadd.s32 4294967295, %s839_s20   ;;  %s610_s29 = sshll.u32 %s980_s2, 1 }
  0x47   : > { %s280_s11 = sand.u32 1, %s1042_s28   ;;  %s284_s15 = scalar_lea.vmem [#allocation4], %s610_s29 }
  0x48   : > { %s281_s6 = scalar_lea.sflag [#allocation5], %s280_s11 }
  0x49   : > { %814 = dma.done.wait (%p913_p7), %s281_s6, 64  }
  0x4a   : > { %816 = vsyncadd (%p913_p7), %s281_s6, 4294967232  ;;  %v359_v0 = vld [vmem:[%s275_s14] sm:$0x3]  ;;  %v612_v1 = vld [vmem:[%s275_s14 + $0x2] sm:$0x3]  ;;  %s293_s25 = scalar_lea.vmem [#allocation6], %s610_s29 }
  0x4b   : > { %v613_v2 = vld [vmem:[%s275_s14 + $0x4] sm:$0x3]  ;;  %v362_v3 = vmax.f32 %v359_v0, %v612_v1  ;;  %v614_v4 = vld [vmem:[%s275_s14 + $0x6] sm:$0x3]  ;;  %v357_v18 = vld [vmem:[%s284_s15] sm:$0x3] }
  0x4c   : > { %vm373_vm0 = vcmp.eq.s32.totalorder %v357_v18, 0  ;;  %vm379_vm1 = vcmp.eq.s32.totalorder %v357_v18, 1  ;;  %vm385_vm2 = vcmp.eq.s32.totalorder %v357_v18, 2  ;;  %vm391_vm3 = vcmp.eq.s32.totalorder %v357_v18, 3  ;;  %v358_v30 = vld [vmem:[%s293_s25] sm:$0x3] }
  0x4d   : > { %v365_v5 = vmax.f32 %v362_v3, %v613_v2  ;;  %v374_v23 = vsel %vm373_vm0, %v359_v0, 0.0  ;;  %vm397_vm4 = vcmp.ne.s32.totalorder %v357_v18, 255  ;;  %vm401_vm5 = vcmask 1041408   ;;  %p338_p7 = scmp.lt.s32.totalorder %s831_s18, 1 }
  0x4e   : > { %v380_v24 = vsel %vm379_vm1, %v612_v1, %v374_v23  ;;  %v846_v34 = vmov 0.0   ;;  %vm354_vm6 = vcmask 0  }
  0x4f   : > { %v368_v6 = vmax.f32 %v365_v5, %v614_v4  ;;  %v386_v25 = vsel %vm385_vm2, %v613_v2, %v380_v24  ;;  %v615_v35 = vsel %vm397_vm4, 1.0, %v846_v34  ;;  %s1051_s18 = smov (!%p338_p7, %s831_s18), 1 }
  0x50   : > { %v392_v26 = vsel %vm391_vm3, %v614_v4, %v386_v25  ;;  %v419_v37 = vsel %vm401_vm5, %v615_v35, 0.0  ;;  %s343_s23 = scalar_lea.vmem %s1032_s3, %s1051_s18  ;;  %s349_s7 = scalar_lea.vmem %s1033_s4, %s1051_s18 }
  0x51   : > { %v369_v7 = vsub.f32 %v359_v0, %v368_v6  ;;  %v375_v8 = vsub.f32 %v612_v1, %v368_v6  ;;  %v381_v9 = vsub.f32 %v613_v2, %v368_v6  ;;  %v387_v10 = vsub.f32 %v614_v4, %v368_v6  ;;  %355 = vst.msk [vmem:[%s343_s23] sm:$0x1] %vm354_vm6, %v846_v34 }
  0x52   : > { %v393_v27 = vsub.f32 %v392_v26, %v368_v6  ;;  %356 = vst.msk [vmem:[%s349_s7] sm:$0x1] %vm354_vm6, %v846_v34 }
  0x53   : > { %v370_v11 = vmul.f32 1.442695, %v369_v7  ;;  %v376_v12 = vmul.f32 1.442695, %v375_v8  ;;  %v382_v13 = vmul.f32 1.442695, %v381_v9 }
  0x54   : > { %v388_v14 = vmul.f32 1.442695, %v387_v10 }
  0x55   : > { %691 = vpow2.f32 %v370_v11 }
  0x56   : > { %693 = vpow2.f32 %v376_v12 }
  0x57   : > { %695 = vpow2.f32 %v382_v13 }
  0x58   : > { %697 = vpow2.f32 %v388_v14  ;;  %v400_v52 = vld [vmem:[%s343_s23] sm:$0x1] }
  0x59   : > { %v416_v55 = vld [vmem:[%s349_s7] sm:$0x1] }
  0x62   : > { %v692_v15 = vpop.eup %691 }
  0x63   : > { %v694_v16 = vpop.eup %693 }
  0x64   : > { %v696_v17 = vpop.eup %695  ;;  %v378_v19 = vadd.f32 %v694_v16, %v692_v15 }
  0x65   : > { %v698_v20 = vpop.eup %697 }
  0x66   : > { %v384_v21 = vadd.f32 %v696_v17, %v378_v19 }
  0x68   : > { %v390_v22 = vadd.f32 %v698_v20, %v384_v21 }
  0x6a   : > { %699 = vlog2.f32 %v390_v22 }
  0x77   : > { %v700_v28 = vpop.eup %699 }
  0x78   : > { %v395_v29 = vmul.f32 0.6931472, %v700_v28 }
  0x7a   : > { %v396_v31 = vsub.f32 %v393_v27, %v395_v29 }
  0x7c   : > { %v398_v32 = vmul.f32 %v396_v31, %v358_v30 }
  0x7e   : > { %v399_v33 = vsel %vm397_vm4, %v398_v32, 0.0 }
  0x7f   : > { %v402_v36 = vsel %vm401_vm5, %v399_v33, 0.0 }
  0x80   : > { %403 = vadd.xlane.f32.xlu0 %v402_v36 }
  0x84   : > { %420 = vadd.xlane.f32.xlu0 %v419_v37 }
 0x109   : > { %v404_v38 = vpop.xlane.xlu0 %403 }
 0x10a   : > { %v405_v39 = vrot.slane %v404_v38, 4 }
 0x10c   : > { %v406_v40 = vadd.f32 %v405_v39, %v404_v38 }
 0x10d   : > { %v421_v41 = vpop.xlane.xlu0 %420 }
 0x10e   : > { %v407_v42 = vrot.slane %v406_v40, 2  ;;  %v422_v43 = vrot.slane %v421_v41, 4 }
 0x110   : > { %v423_v44 = vadd.f32 %v422_v43, %v421_v41  ;;  %v408_v45 = vadd.f32 %v407_v42, %v406_v40 }
 0x112   : > { %v424_v46 = vrot.slane %v423_v44, 2  ;;  %v409_v47 = vrot.slane %v408_v45, 1 }
 0x114   : > { %v425_v48 = vadd.f32 %v424_v46, %v423_v44  ;;  %v410_v49 = vadd.f32 %v409_v47, %v408_v45 }
 0x116   : > { %619 = vpush %v410_v49  ;;  %v426_v50 = vrot.slane %v425_v48, 1 }
 0x118   : > { %v427_v51 = vadd.f32 %v426_v50, %v425_v48 }
 0x11a   : > { %621 = vpush %v427_v51 }
 0x147   : > { %s620_s18 = spop %619 }
 0x148   : > { %v412_v53 = vstv %s620_s18 }
 0x149   : > { %v413_v54 = vadd.f32 %v412_v53, %v400_v52 }
 0x14b   : > { %415 = vst.msk [vmem:[%s343_s23] sm:$0x1] %vm354_vm6, %v413_v54  ;;  %s622_s30 = spop %621 }
 0x14c   : > { %v429_v56 = vstv %s622_s30 }
 0x14d   : > { %v430_v57 = vadd.f32 %v429_v56, %v416_v55 }
 0x14f   : > { %431 = vst.msk [vmem:[%s349_s7] sm:$0x1] %vm354_vm6, %v430_v57 }
 0x150 PF: > { %s21_s20 = sadd.s32 1, %s839_s20   ;;  %s1043_s15 = smov %s823_s16 }
 0x151   : > { %p18_p9 = scmp.ge.s32.totalorder %s21_s20, 4   ;;  %s1044_s16 = smov %s827_s17 }
 0x152   : > { %s1045_s17 = smov %s919_s26  ;;  %s1046_s18 = smov %s835_s19 }
 0x153   : > { %s1047_s19 = smov %s1049_s22  ;;  %20 = sbr.rel (!%p18_p9) target bundleno = 9 (0x9), region = 115 }
 0x158   :  { %473 = vsyncpa [#allocation3], 1 }
 0x159   :  { %475 = vsyncpa [#allocation3 + $0x1], 1 }
 0x15a   :  { %476 = vsyncpa [#allocation5], 1 }
 0x15b   :  { %478 = vsyncpa [#allocation5 + $0x1], 1 }

</bundles_post_ra>
